<compile_context>
chip_gen: v6e
topology: v6e:2x2x1
jax: 0.10.0
libtpu: 0.0.40
codegen_flags: <defaults>
</compile_context>

<pallas_src>
import functools

import jax
import jax.numpy as jnp
from jax import lax
from jax.experimental import pallas as pl
from jax.experimental.pallas import tpu as pltpu

EPS = 1e-5


def _round_up(n, m):
    return (n + m - 1) // m * m


# ----------------------------- kernel ----------------------------------------

def residual_block_kernel(x_ref, p_ref, w1_ref, w2_ref, o_ref):
    """Fused: BN1(affine) -> ReLU -> Linear1(+BN2 folded) -> ReLU -> (Dropout=id) -> Linear2 -> +x."""
    x = x_ref[...].astype(jnp.float32)          # (TB, Hp)
    p = p_ref[...]                              # (8, Hp) packed params (rows 4..7 unused)
    s1, t1 = p[0:1, :], p[1:2, :]               # BN1 folded affine
    b1, b2 = p[2:3, :], p[3:4, :]               # Linear1 bias (BN2 folded) / Linear2 bias

    h = jnp.maximum(x * s1 + t1, 0.0)           # BN1 + ReLU (VPU, hidden under MXU/DMA)

    # Linear1 with BN2 folded into its weight/bias; bf16 MXU inputs, f32 accumulation.
    h = jnp.dot(h.astype(w1_ref.dtype), w1_ref[...],
                preferred_element_type=jnp.float32) + b1
    h = jnp.maximum(h, 0.0)                     # ReLU; Dropout: eval mode => identity.

    # Linear2 + residual add.
    h = jnp.dot(h.astype(w2_ref.dtype), w2_ref[...],
                preferred_element_type=jnp.float32) + b2
    o_ref[...] = (h + x).astype(o_ref.dtype)


# ------------------------ parameter folding / padding ------------------------

def fold_and_pad_params(p, Hp, weight_dtype=jnp.bfloat16):
    """Fold BN1 -> (scale, shift), fold BN2 into Linear1, pre-transpose weights,
    cast weights to bf16 and zero-pad everything from H to Hp lanes.
    Vector params are packed into one (8, Hp) f32 tile (rows: s1, t1, b1, b2)."""
    H = p["w1"].shape[0]

    scale1 = p["bn1_gamma"] * lax.rsqrt(p["bn1_var"] + EPS)
    shift1 = p["bn1_beta"] - p["bn1_mean"] * scale1
    scale2 = p["bn2_gamma"] * lax.rsqrt(p["bn2_var"] + EPS)
    shift2 = p["bn2_beta"] - p["bn2_mean"] * scale2

    w1_eff = p["w1"].T * scale2[None, :]        # PyTorch (out,in) -> (in,out), BN2 scale folded
    b1_eff = p["b1"] * scale2 + shift2          # BN2 shift folded into Linear1 bias
    w2_t = p["w2"].T
    b2 = p["b2"]

    def pad_vec(v):
        return jnp.pad(v.astype(jnp.float32), (0, Hp - H))

    params = jnp.zeros((8, Hp), jnp.float32)
    params = params.at[0].set(pad_vec(scale1))
    params = params.at[1].set(pad_vec(shift1))
    params = params.at[2].set(pad_vec(b1_eff))
    params = params.at[3].set(pad_vec(b2))

    def pad_mat(w):
        return jnp.pad(w, ((0, Hp - H), (0, Hp - H))).astype(weight_dtype)

    return {"params": params, "w1": pad_mat(w1_eff), "w2": pad_mat(w2_t)}


# ----------------------------- VMEM budgeting --------------------------------

def _vmem_capacity_bytes():
    try:
        info = pltpu.get_tpu_info()
        cap = getattr(info, "vmem_capacity_bytes", None)
        if cap:
            return int(cap)
    except Exception:
        pass
    return 64 << 20                              # conservative (v7x per-TC VMEM)


# Per-row VMEM bytes: x tile (2x f32 buffers) + out tile (2x f32) + f32
# intermediate h + two bf16 cast copies  ==  (8 + 8 + 4 + 4) * Hp, rounded up.
def _per_row_bytes(Hp):
    return 28 * Hp


def _choose_tb(B, Hp, w_itemsize, block_b):
    """Largest multiple-of-8 batch tile that fits the VMEM budget (<= block_b)."""
    cap = _vmem_capacity_bytes()
    budget = cap - (8 << 20)                     # compiler headroom
    w_bytes = 2 * Hp * Hp * w_itemsize           # both weights, single-buffered
    p_bytes = 8 * Hp * 4
    avail = max(0, budget - w_bytes - p_bytes)
    tb_max = max(8, int(avail // _per_row_bytes(Hp)))
    TB = min(int(block_b), tb_max)
    TB = max(8, (TB // 8) * 8)
    TB = min(TB, _round_up(B, 8))
    return TB


def _vmem_limit(TB, Hp, w_itemsize, resident_bufs):
    cap = _vmem_capacity_bytes()
    w_bytes = resident_bufs * 2 * Hp * Hp * w_itemsize
    p_bytes = resident_bufs * 8 * Hp * 4
    want = w_bytes + p_bytes + TB * _per_row_bytes(Hp) + (4 << 20)
    return int(min(cap - (4 << 20), max(16 << 20, want)))


# ------------------------------- wrapper --------------------------------------

def _pallas_forward(xp, folded, TB, vmem_limit, use_buffered, parallel):
    Bp, Hp = xp.shape
    tile = pl.BlockSpec((TB, Hp), lambda i: (i, 0))          # pipelined per grid step
    resident_kw = {"pipeline_mode": pl.Buffered(1)} if use_buffered else {}
    row = pl.BlockSpec((8, Hp), lambda i: (0, 0), **resident_kw)   # resident packed params
    mat = pl.BlockSpec((Hp, Hp), lambda i: (0, 0), **resident_kw)  # resident weights

    return pl.pallas_call(
        residual_block_kernel,
        out_shape=jax.ShapeDtypeStruct((Bp, Hp), xp.dtype),
        grid=(Bp // TB,),
        in_specs=[tile, row, mat, mat],
        out_specs=tile,
        compiler_params=pltpu.CompilerParams(
            dimension_semantics=("parallel",) if parallel else ("arbitrary",),
            vmem_limit_bytes=vmem_limit,
        ),
    )(xp, folded["params"], folded["w1"], folded["w2"])


def residual_block(x, folded, block_b=1024):
    """x: (B, H) float32. folded: output of fold_and_pad_params (feature dim Hp)."""
    B, H = x.shape
    Hp = folded["w1"].shape[0]
    w_itemsize = jnp.dtype(folded["w1"].dtype).itemsize

    TB = _choose_tb(B, Hp, w_itemsize, block_b)
    Bp = _round_up(B, TB)

    # Skip the extra pad/slice HBM passes when the shape is already aligned.
    need_pad = (Bp != B) or (Hp != H)
    xp = x.astype(jnp.float32)
    if need_pad:
        xp = jnp.pad(xp, ((0, Bp - B), (0, Hp - H)))

    grid_len = Bp // TB
    parallel = grid_len >= 4     # few tiles: megacore weight duplication not worth it

    try:
        out = _pallas_forward(xp, folded, TB, _vmem_limit(TB, Hp, w_itemsize, 1),
                              use_buffered=True, parallel=parallel)
        out = jax.block_until_ready(out)
    except Exception:
        # Fallback if pipeline_mode=pl.Buffered(1) is unsupported in this JAX build.
        out = _pallas_forward(xp, folded, TB, _vmem_limit(TB, Hp, w_itemsize, 2),
                              use_buffered=False, parallel=parallel)
        out = jax.block_until_ready(out)

    if need_pad:
        out = out[:B, :H]
    return out


# ----------------------------- references -------------------------------------

def reference_exact(x, p):
    """Pure-JAX f32 eval-mode reference of the original module (no folding, no bf16)."""
    h = (x - p["bn1_mean"]) * (p["bn1_gamma"] / jnp.sqrt(p["bn1_var"] + EPS)) + p["bn1_beta"]
    h = jnp.maximum(h, 0.0)
    h = h @ p["w1"].T + p["b1"]
    h = (h - p["bn2_mean"]) * (p["bn2_gamma"] / jnp.sqrt(p["bn2_var"] + EPS)) + p["bn2_beta"]
    h = jnp.maximum(h, 0.0)
    h = h @ p["w2"].T + p["b2"]
    return h + x


def reference_folded(x, folded, H):
    """Reference matching the kernel's folded/bf16 numerics (tight tolerance check)."""
    Hp = folded["w1"].shape[0]
    xp = jnp.pad(x, ((0, 0), (0, Hp - H)))
    prm = folded["params"]
    h = jnp.maximum(xp * prm[0:1] + prm[1:2], 0.0)
    h = jnp.dot(h.astype(folded["w1"].dtype), folded["w1"],
                preferred_element_type=jnp.float32) + prm[2:3]
    h = jnp.maximum(h, 0.0)
    h = jnp.dot(h.astype(folded["w2"].dtype), folded["w2"],
                preferred_element_type=jnp.float32) + prm[3:4]
    return (h + xp)[:, :H]


# ------------------------------- demo ------------------------------------------

if __name__ == "__main__":
    key = jax.random.PRNGKey(0)
    ks = jax.random.split(key, 9)

    B, H = 8, 32                       # small demo shape consistent with the module
    x = jax.random.normal(ks[0], (B, H), jnp.float32)

    bound = 1.0 / jnp.sqrt(H)
    raw = {
        "bn1_gamma": jnp.ones((H,), jnp.float32),
        "bn1_beta": jnp.zeros((H,), jnp.float32),
        "bn1_mean": jax.random.normal(ks[1], (H,), jnp.float32) * 0.1,
        "bn1_var": jax.random.uniform(ks[2], (H,), jnp.float32, minval=0.5, maxval=1.5),
        "w1": jax.random.uniform(ks[3], (H, H), jnp.float32, minval=-bound, maxval=bound),
        "b1": jax.random.uniform(ks[4], (H,), jnp.float32, minval=-bound, maxval=bound),
        "bn2_gamma": jnp.ones((H,), jnp.float32),
        "bn2_beta": jnp.zeros((H,), jnp.float32),
        "bn2_mean": jax.random.normal(ks[5], (H,), jnp.float32) * 0.1,
        "bn2_var": jax.random.uniform(ks[6], (H,), jnp.float32, minval=0.5, maxval=1.5),
        "w2": jax.random.uniform(ks[7], (H, H), jnp.float32, minval=-bound, maxval=bound),
        "b2": jax.random.uniform(ks[8], (H,), jnp.float32, minval=-bound, maxval=bound),
    }

    Hp = _round_up(H, 128)                      # lane-dense feature dim
    folded = fold_and_pad_params(raw, Hp, weight_dtype=jnp.bfloat16)

    out = residual_block(x, folded)
    out = jax.block_until_ready(out)
    assert out.shape == (B, H)

    # Tight check vs a reference with the same folded/bf16 numerics.
    ref_tight = reference_folded(x, folded, H)
    assert jnp.allclose(out, ref_tight, atol=1e-3, rtol=1e-3), "mismatch vs folded/bf16 reference"

    # Loose check vs the exact f32, unfolded eval-mode module semantics.
    ref_exact = reference_exact(x, raw)
    assert jnp.allclose(out, ref_exact, atol=5e-2, rtol=5e-2), "mismatch vs exact f32 reference"

    print("KERNEL_OK")
</pallas_src>

<mosaic_0001>
module attributes {stable_mosaic.version = 11 : i64} {
  func.func @residual_block_kernel(%arg0: i32, %arg1: memref<8x128xf32, #tpu.memory_space<vmem>>, %arg2: memref<8x128xf32, #tpu.memory_space<vmem>>, %arg3: memref<128x128xbf16, #tpu.memory_space<vmem>>, %arg4: memref<128x128xbf16, #tpu.memory_space<vmem>>, %arg5: memref<8x128xf32, #tpu.memory_space<vmem>>) attributes {dimension_semantics = [#tpu.dimension_semantics<arbitrary>], iteration_bounds = array<i64: 1>, scalar_prefetch = 0 : i64, scratch_operands = 0 : i64, tpu.core_type = #tpu.core_type<tc>, window_params = [{transform_indices = @transform_0, window_bounds = array<i64: 8, 128>}, {pipeline_mode = #tpu.pipeline_mode<synchronous>, transform_indices = @transform_1, window_bounds = array<i64: 8, 128>}, {pipeline_mode = #tpu.pipeline_mode<synchronous>, transform_indices = @transform_2, window_bounds = array<i64: 128, 128>}, {pipeline_mode = #tpu.pipeline_mode<synchronous>, transform_indices = @transform_3, window_bounds = array<i64: 128, 128>}, {transform_indices = @transform_4, window_bounds = array<i64: 8, 128>}]} {
    %c0 = arith.constant 0 : index
    %c0_0 = arith.constant 0 : index
    %0 = vector.load %arg1[%c0, %c0_0] : memref<8x128xf32, #tpu.memory_space<vmem>>, vector<8x128xf32>
    %c0_1 = arith.constant 0 : index
    %c0_2 = arith.constant 0 : index
    %1 = vector.load %arg2[%c0_1, %c0_2] : memref<8x128xf32, #tpu.memory_space<vmem>>, vector<8x128xf32>
    %2 = vector.extract_strided_slice %1 {offsets = [0, 0], sizes = [1, 128], strides = [1, 1]} : vector<8x128xf32> to vector<1x128xf32>
    %3 = vector.extract_strided_slice %1 {offsets = [1, 0], sizes = [1, 128], strides = [1, 1]} : vector<8x128xf32> to vector<1x128xf32>
    %4 = vector.extract_strided_slice %1 {offsets = [2, 0], sizes = [1, 128], strides = [1, 1]} : vector<8x128xf32> to vector<1x128xf32>
    %5 = vector.extract_strided_slice %1 {offsets = [3, 0], sizes = [1, 128], strides = [1, 1]} : vector<8x128xf32> to vector<1x128xf32>
    %6 = vector.broadcast %2 : vector<1x128xf32> to vector<8x128xf32>
    %7 = arith.mulf %0, %6 : vector<8x128xf32>
    %8 = vector.broadcast %3 : vector<1x128xf32> to vector<8x128xf32>
    %9 = arith.addf %7, %8 : vector<8x128xf32>
    %cst = arith.constant 0.000000e+00 : f32
    %10 = vector.broadcast %cst : f32 to vector<8x128xf32>
    %11 = arith.maximumf %9, %10 : vector<8x128xf32>
    %12 = arith.truncf %11 : vector<8x128xf32> to vector<8x128xbf16>
    %c0_3 = arith.constant 0 : index
    %c0_4 = arith.constant 0 : index
    %13 = vector.load %arg3[%c0_3, %c0_4] : memref<128x128xbf16, #tpu.memory_space<vmem>>, vector<128x128xbf16>
    %cst_5 = arith.constant dense<0.000000e+00> : vector<8x128xf32>
    %14 = tpu.matmul %12, %13, %cst_5 {dimension_numbers = #tpu.dot_dimension_numbers<[1], [0], [0], [1], [0, 0, 1, 1], [], []>} : vector<8x128xbf16>, vector<128x128xbf16>, vector<8x128xf32> -> vector<8x128xf32>
    %15 = vector.broadcast %4 : vector<1x128xf32> to vector<8x128xf32>
    %16 = arith.addf %14, %15 : vector<8x128xf32>
    %cst_6 = arith.constant 0.000000e+00 : f32
    %17 = vector.broadcast %cst_6 : f32 to vector<8x128xf32>
    %18 = arith.maximumf %16, %17 : vector<8x128xf32>
    %19 = arith.truncf %18 : vector<8x128xf32> to vector<8x128xbf16>
    %c0_7 = arith.constant 0 : index
    %c0_8 = arith.constant 0 : index
    %20 = vector.load %arg4[%c0_7, %c0_8] : memref<128x128xbf16, #tpu.memory_space<vmem>>, vector<128x128xbf16>
    %cst_9 = arith.constant dense<0.000000e+00> : vector<8x128xf32>
    %21 = tpu.matmul %19, %20, %cst_9 {dimension_numbers = #tpu.dot_dimension_numbers<[1], [0], [0], [1], [0, 0, 1, 1], [], []>} : vector<8x128xbf16>, vector<128x128xbf16>, vector<8x128xf32> -> vector<8x128xf32>
    %22 = vector.broadcast %5 : vector<1x128xf32> to vector<8x128xf32>
    %23 = arith.addf %21, %22 : vector<8x128xf32>
    %24 = arith.addf %23, %0 : vector<8x128xf32>
    %c0_10 = arith.constant 0 : index
    %c0_11 = arith.constant 0 : index
    %25 = vector.load %arg5[%c0_10, %c0_11] : memref<8x128xf32, #tpu.memory_space<vmem>>, vector<8x128xf32>
    tpu.vector_store %arg5[%c0_10, %c0_11], %24 {strides = array<i32>} : memref<8x128xf32, #tpu.memory_space<vmem>>, vector<8x128xf32>,
    return
  }
  func.func @transform_0(%arg0: i32) -> (i32, i32) {
    %c0_i32 = arith.constant 0 : i32
    %c0_i32_0 = arith.constant 0 : i32
    return %arg0, %c0_i32 : i32, i32
  }
  func.func @transform_1(%arg0: i32) -> (i32, i32) {
    %c0_i32 = arith.constant 0 : i32
    %c0_i32_0 = arith.constant 0 : i32
    %c0_i32_1 = arith.constant 0 : i32
    return %c0_i32, %c0_i32_0 : i32, i32
  }
  func.func @transform_2(%arg0: i32) -> (i32, i32) {
    %c0_i32 = arith.constant 0 : i32
    %c0_i32_0 = arith.constant 0 : i32
    %c0_i32_1 = arith.constant 0 : i32
    return %c0_i32, %c0_i32_0 : i32, i32
  }
  func.func @transform_3(%arg0: i32) -> (i32, i32) {
    %c0_i32 = arith.constant 0 : i32
    %c0_i32_0 = arith.constant 0 : i32
    %c0_i32_1 = arith.constant 0 : i32
    return %c0_i32, %c0_i32_0 : i32, i32
  }
  func.func @transform_4(%arg0: i32) -> (i32, i32) {
    %c0_i32 = arith.constant 0 : i32
    %c0_i32_0 = arith.constant 0 : i32
    return %arg0, %c0_i32 : i32, i32
  }
}

module attributes {stable_mosaic.version = 11 : i64} {
  func.func @residual_block_kernel(%arg0: i32, %arg1: memref<8x128xf32, #tpu.memory_space<vmem>>, %arg2: memref<8x128xf32, #tpu.memory_space<vmem>>, %arg3: memref<128x128xbf16, #tpu.memory_space<vmem>>, %arg4: memref<128x128xbf16, #tpu.memory_space<vmem>>, %arg5: memref<8x128xf32, #tpu.memory_space<vmem>>) attributes {dimension_semantics = [#tpu.dimension_semantics<arbitrary>], iteration_bounds = array<i64: 1>, scalar_prefetch = 0 : i64, scratch_operands = 0 : i64, tpu.core_type = #tpu.core_type<tc>, window_params = [{transform_indices = @transform_0, window_bounds = array<i64: 8, 128>}, {pipeline_mode = #tpu.pipeline_mode<synchronous>, transform_indices = @transform_1, window_bounds = array<i64: 8, 128>}, {pipeline_mode = #tpu.pipeline_mode<synchronous>, transform_indices = @transform_2, window_bounds = array<i64: 128, 128>}, {pipeline_mode = #tpu.pipeline_mode<synchronous>, transform_indices = @transform_3, window_bounds = array<i64: 128, 128>}, {transform_indices = @transform_4, window_bounds = array<i64: 8, 128>}]} {
    %c0 = arith.constant 0 : index
    %c0_0 = arith.constant 0 : index
    %0 = vector.load %arg1[%c0, %c0_0] : memref<8x128xf32, #tpu.memory_space<vmem>>, vector<8x128xf32>
    %c0_1 = arith.constant 0 : index
    %c0_2 = arith.constant 0 : index
    %1 = vector.load %arg2[%c0_1, %c0_2] : memref<8x128xf32, #tpu.memory_space<vmem>>, vector<8x128xf32>
    %2 = vector.extract_strided_slice %1 {offsets = [0, 0], sizes = [1, 128], strides = [1, 1]} : vector<8x128xf32> to vector<1x128xf32>
    %3 = vector.extract_strided_slice %1 {offsets = [1, 0], sizes = [1, 128], strides = [1, 1]} : vector<8x128xf32> to vector<1x128xf32>
    %4 = vector.extract_strided_slice %1 {offsets = [2, 0], sizes = [1, 128], strides = [1, 1]} : vector<8x128xf32> to vector<1x128xf32>
    %5 = vector.extract_strided_slice %1 {offsets = [3, 0], sizes = [1, 128], strides = [1, 1]} : vector<8x128xf32> to vector<1x128xf32>
    %6 = vector.broadcast %2 : vector<1x128xf32> to vector<8x128xf32>
    %7 = arith.mulf %0, %6 : vector<8x128xf32>
    %8 = vector.broadcast %3 : vector<1x128xf32> to vector<8x128xf32>
    %9 = arith.addf %7, %8 : vector<8x128xf32>
    %cst = arith.constant 0.000000e+00 : f32
    %10 = vector.broadcast %cst : f32 to vector<8x128xf32>
    %11 = arith.maximumf %9, %10 : vector<8x128xf32>
    %12 = arith.truncf %11 : vector<8x128xf32> to vector<8x128xbf16>
    %c0_3 = arith.constant 0 : index
    %c0_4 = arith.constant 0 : index
    %13 = vector.load %arg3[%c0_3, %c0_4] : memref<128x128xbf16, #tpu.memory_space<vmem>>, vector<128x128xbf16>
    %cst_5 = arith.constant dense<0.000000e+00> : vector<8x128xf32>
    %14 = tpu.matmul %12, %13, %cst_5 {dimension_numbers = #tpu.dot_dimension_numbers<[1], [0], [0], [1], [0, 0, 1, 1], [], []>} : vector<8x128xbf16>, vector<128x128xbf16>, vector<8x128xf32> -> vector<8x128xf32>
    %15 = vector.broadcast %4 : vector<1x128xf32> to vector<8x128xf32>
    %16 = arith.addf %14, %15 : vector<8x128xf32>
    %cst_6 = arith.constant 0.000000e+00 : f32
    %17 = vector.broadcast %cst_6 : f32 to vector<8x128xf32>
    %18 = arith.maximumf %16, %17 : vector<8x128xf32>
    %19 = arith.truncf %18 : vector<8x128xf32> to vector<8x128xbf16>
    %c0_7 = arith.constant 0 : index
    %c0_8 = arith.constant 0 : index
    %20 = vector.load %arg4[%c0_7, %c0_8] : memref<128x128xbf16, #tpu.memory_space<vmem>>, vector<128x128xbf16>
    %cst_9 = arith.constant dense<0.000000e+00> : vector<8x128xf32>
    %21 = tpu.matmul %19, %20, %cst_9 {dimension_numbers = #tpu.dot_dimension_numbers<[1], [0], [0], [1], [0, 0, 1, 1], [], []>} : vector<8x128xbf16>, vector<128x128xbf16>, vector<8x128xf32> -> vector<8x128xf32>
    %22 = vector.broadcast %5 : vector<1x128xf32> to vector<8x128xf32>
    %23 = arith.addf %21, %22 : vector<8x128xf32>
    %24 = arith.addf %23, %0 : vector<8x128xf32>
    %c0_10 = arith.constant 0 : index
    %c0_11 = arith.constant 0 : index
    %25 = vector.load %arg5[%c0_10, %c0_11] : memref<8x128xf32, #tpu.memory_space<vmem>>, vector<8x128xf32>
    tpu.vector_store %arg5[%c0_10, %c0_11], %24 {strides = array<i32>} : memref<8x128xf32, #tpu.memory_space<vmem>>, vector<8x128xf32>,
    return
  }
  func.func @transform_0(%arg0: i32) -> (i32, i32) {
    %c0_i32 = arith.constant 0 : i32
    %c0_i32_0 = arith.constant 0 : i32
    return %arg0, %c0_i32 : i32, i32
  }
  func.func @transform_1(%arg0: i32) -> (i32, i32) {
    %c0_i32 = arith.constant 0 : i32
    %c0_i32_0 = arith.constant 0 : i32
    %c0_i32_1 = arith.constant 0 : i32
    return %c0_i32, %c0_i32_0 : i32, i32
  }
  func.func @transform_2(%arg0: i32) -> (i32, i32) {
    %c0_i32 = arith.constant 0 : i32
    %c0_i32_0 = arith.constant 0 : i32
    %c0_i32_1 = arith.constant 0 : i32
    return %c0_i32, %c0_i32_0 : i32, i32
  }
  func.func @transform_3(%arg0: i32) -> (i32, i32) {
    %c0_i32 = arith.constant 0 : i32
    %c0_i32_0 = arith.constant 0 : i32
    %c0_i32_1 = arith.constant 0 : i32
    return %c0_i32, %c0_i32_0 : i32, i32
  }
  func.func @transform_4(%arg0: i32) -> (i32, i32) {
    %c0_i32 = arith.constant 0 : i32
    %c0_i32_0 = arith.constant 0 : i32
    return %arg0, %c0_i32 : i32, i32
  }
}

</mosaic_0001>

<bundles_post_ra>
// kernel: tpu_custom_call.1
= control target key start
LH: loop header
LB: loop body
LE: loop exit
PB: predicated region body
PF: predicated region fallthrough
CT: control target
= control target key end

     0   :  { %9 = vsyncpa [#allocation3], 0  ;;  %s583_s0 = inlined_call_operand.hbm [shape: f32[8,128], index: 0, kind: input, shape index: {}]   ;;  %s584_s1 = inlined_call_operand.hbm [shape: f32[8,128], index: 1, kind: input, shape index: {}]   ;;  %s585_s2 = inlined_call_operand.hbm [shape: bf16[128,128], index: 2, kind: input, shape index: {}]   ;;  %s586_s3 = inlined_call_operand.hbm [shape: bf16[128,128], index: 3, kind: input, shape index: {}]   ;;  %s587_s4 = inlined_call_operand.hbm [shape: f32[8,128], index: 4, kind: output, shape index: {}]  }
   0x1   :  { %10 = vsyncpa [#allocation6], 0 }
   0x2   :  { %11 = vsyncpa [#allocation9], 0 }
   0x3   :  { %12 = vsyncpa [#allocation4], 0  ;;  %s528_s15 = smov [#allocation5]   ;;  %s529_s17 = smov [#allocation2]  }
   0x4   :  { %s29_s16 = sshll.u32 %s528_s15, 4  ;;  %s19_s18 = sshll.u32 %s529_s17, 4  ;;  %s30_s16 = int_to_ptr.vmem [resolvable:$true] %s29_s16  ;;  %s20_s18 = int_to_ptr.vmem [resolvable:$true] %s19_s18 }
   0x5   :  { %s428_s19 = scalar_lea.vmem %s30_s16, 128  ;;  %p433_p1 = scmp.lt.s32.totalorder %s30_s16, %s30_s16 }
   0x6   :  { %p429_p0 = scmp.ne.s32.totalorder %s30_s16, %s428_s19  ;;  %p434_p2 = scmp.lt.s32.totalorder %s428_s19, %s428_s19 }
   0x8   :  { %p435_p3 = por %p434_p2, %p433_p1 }
   0xa   :  { %p436_p4 = pnand %p435_p3, %p429_p0 }
   0xc   :  { %439 = shalt.err (!%p436_p4)
}
   0xd   :  { %32 = dma.hbm_to_vmem [thread:$0]  %s584_s1, 128, %s30_s16, [#allocation6]  }
   0xe   :  { %s448_s22 = scalar_lea.vmem %s20_s18, 128  ;;  %p453_p6 = scmp.lt.s32.totalorder %s20_s18, %s20_s18 }
   0xf   :  { %p449_p5 = scmp.ne.s32.totalorder %s20_s18, %s448_s22  ;;  %p454_p7 = scmp.lt.s32.totalorder %s448_s22, %s448_s22 }
  0x11   :  { %p455_p8 = por %p454_p7, %p453_p6 }
  0x13   :  { %p456_p9 = pnand %p455_p8, %p449_p5 }
  0x15   :  { %459 = shalt.err (!%p456_p9)
}
  0x16   :  { %22 = dma.hbm_to_vmem [thread:$0]  %s583_s0, 128, %s20_s18, [#allocation3]  }
  0x17   :  { %s530_s25 = smov [#allocation7]  }
  0x18   :  { %s38_s26 = sshll.u32 %s530_s25, 4  ;;  %s39_s26 = int_to_ptr.vmem [resolvable:$true] %s38_s26 }
  0x19   :  { %s468_s27 = scalar_lea.vmem %s39_s26, 1024  ;;  %p473_p11 = scmp.lt.s32.totalorder %s39_s26, %s39_s26 }
  0x1a   :  { %p469_p10 = scmp.ne.s32.totalorder %s39_s26, %s468_s27  ;;  %p474_p12 = scmp.lt.s32.totalorder %s468_s27, %s468_s27 }
  0x1c   :  { %p475_p13 = por %p474_p12, %p473_p11 }
  0x1e   :  { %p476_p0 = pnand %p475_p13, %p469_p10 }
  0x20   :  { %479 = shalt.err (!%p476_p0)
}
  0x21   :  { %s531_s1 = smov 64   ;;  %s532_s28 = smov 4  }
  0x22   :  { %44 = dma.hbm_to_vmem [thread:$0]  %s585_s2, 1024, %s39_s26, [#allocation6], %s531_s1, %s531_s1, %s532_s28  }
  0x23   :  { %s533_s5 = smov [#allocation8]  }
  0x24   :  { %s50_s6 = sshll.u32 %s533_s5, 4  ;;  %s51_s6 = int_to_ptr.vmem [resolvable:$true] %s50_s6 }
  0x25   :  { %s488_s0 = scalar_lea.vmem %s51_s6, 1024  ;;  %p493_p2 = scmp.lt.s32.totalorder %s51_s6, %s51_s6 }
  0x26   :  { %p489_p1 = scmp.ne.s32.totalorder %s51_s6, %s488_s0  ;;  %p494_p3 = scmp.lt.s32.totalorder %s488_s0, %s488_s0 }
  0x28   :  { %p495_p4 = por %p494_p3, %p493_p2 }
  0x2a   :  { %p496_p5 = pnand %p495_p4, %p489_p1 }
  0x2c   :  { %499 = shalt.err (!%p496_p5)
}
  0x2d   :  { %56 = dma.hbm_to_vmem [thread:$0]  %s586_s3, 1024, %s51_s6, [#allocation9], %s531_s1, %s531_s1, %s532_s28  }
  0x2e   :  { %520 = dma.done.wait [#allocation3], 128  }
  0x2f   :  { %521 = vsyncadd [#allocation3], 4294967168 }
  0x30   :  { %522 = dma.done.wait [#allocation6], 1152  }
  0x31   :  { %523 = vsyncadd [#allocation6], 4294966144 }
  0x32   :  { %524 = dma.done.wait [#allocation9], 1024  }
  0x33   :  { %525 = vsyncadd [#allocation9], 4294966272  ;;  %v534_v0 = vmov 0.0   ;;  %vm535_vm0 = vmmov 0   ;;  %v404_v1 = vld [vmem:[#allocation7 + $0x38] sm:$0xff]   ;;  %v72_v2 = vlaneseq  ;;  %v405_v3 = vld [vmem:[#allocation7 + $0x30] sm:$0xff]  }
  0x34   :  { %355 = vmatprep.subr.bf16.mxu0 %v534_v0  ;;  %371 = vmatprep.mubr.msk.bf16.mxu0 %vm535_vm0, %v534_v0  ;;  %v406_v5 = vld [vmem:[#allocation7 + $0x28] sm:$0xff]   ;;  %v407_v6 = vld [vmem:[#allocation7 + $0x20] sm:$0xff]   ;;  %v412_v8 = vld [vmem:[#allocation8 + $0x38] sm:$0xff]   ;;  %s536_s2 = smov [#allocation10]  }
  0x35   :  { %375 = vmatprep.subr.bf16.mxu1 %v534_v0  ;;  %391 = vmatprep.mubr.msk.bf16.mxu1 %vm535_vm0, %v534_v0  ;;  %v574_v4 = vshrl.u32 %v72_v2, 7  ;;  %v71_v9 = vld [vmem:[#allocation5] sm:$0xff]  ;;  %v413_v10 = vld [vmem:[#allocation8 + $0x30] sm:$0xff]   ;;  %v414_v15 = vld [vmem:[#allocation8 + $0x28] sm:$0xff]   ;;  %s310_s3 = sshll.u32 %s536_s2, 4  ;;  %s311_s3 = int_to_ptr.vmem [resolvable:$true] %s310_s3 }
  0x36   :  { %356 = vmatpush3.bf16.msra.mxu0 %v404_v1  ;;  %376 = vmatpush3.bf16.msra.mxu1 %v412_v8  ;;  %v408_v11 = vld [vmem:[#allocation7 + $0x18] sm:$0xff]   ;;  %v70_v14 = vld [vmem:[#allocation2] sm:$0xff]  ;;  %v415_v19 = vld [vmem:[#allocation8 + $0x20] sm:$0xff]   ;;  %s500_s9 = scalar_lea.vmem %s311_s3, 128  ;;  %p505_p7 = scmp.lt.s32.totalorder %s311_s3, %s311_s3 }
  0x37   :  { %357 = vmatprep.subr.bf16.mxu0 %v534_v0  ;;  %v74_v7 = vsub.s32 0, %v574_v4  ;;  %377 = vmatprep.subr.bf16.mxu1 %v534_v0  ;;  %v79_v13 = vsub.s32 1, %v574_v4  ;;  %v409_v18 = vld [vmem:[#allocation7 + $0x10] sm:$0xff]   ;;  %v410_v21 = vld [vmem:[#allocation7 + $0x8] sm:$0xff]   ;;  %v416_v22 = vld [vmem:[#allocation8 + $0x18] sm:$0xff]   ;;  %v102_v29 = vsub.s32 2, %v574_v4  ;;  %p501_p6 = scmp.ne.s32.totalorder %s311_s3, %s500_s9  ;;  %p506_p8 = scmp.lt.s32.totalorder %s500_s9, %s500_s9 }
  0x38   :  { %v411_v24 = vld [vmem:[#allocation7] sm:$0xff]   ;;  %v417_v25 = vld [vmem:[#allocation8 + $0x10] sm:$0xff]   ;;  %v418_v27 = vld [vmem:[#allocation8 + $0x8] sm:$0xff]   ;;  %v212_v38 = vsub.s32 3, %v574_v4 }
  0x39   :  { %v75_v12 = vrot.slane %v71_v9, %v74_v7  ;;  %v80_v17 = vrot.slane %v71_v9, %v79_v13  ;;  %v419_v28 = vld [vmem:[#allocation8] sm:$0xff]   ;;  %v103_v30 = vrot.slane %v71_v9, %v102_v29  ;;  %p507_p9 = por %p506_p8, %p505_p7 }
  0x3a   :  { %358 = vmatpush3.bf16.msra.mxu0 %v405_v3  ;;  %378 = vmatpush3.bf16.msra.mxu1 %v413_v10  ;;  %v213_v39 = vrot.slane %v71_v9, %v212_v38 }
  0x3b   :  { %359 = vmatprep.subr.bf16.mxu0 %v534_v0  ;;  %379 = vmatprep.subr.bf16.mxu1 %v534_v0  ;;  %v76_v16 = vmul.f32 %v75_v12, %v70_v14  ;;  %p508_p10 = pnand %p507_p9, %p501_p6 }
  0x3d   :  { %v81_v20 = vadd.f32 %v80_v17, %v76_v16 }
  0x3e   :  { %360 = vmatpush3.bf16.msra.mxu0 %v406_v5  ;;  %380 = vmatpush3.bf16.msra.mxu1 %v414_v15 }
  0x3f   :  { %361 = vmatprep.subr.bf16.mxu0 %v534_v0  ;;  %381 = vmatprep.subr.bf16.mxu1 %v534_v0  ;;  %v82_v23 = vmax.f32 %v81_v20, 0.0 }
  0x41   :  { %v83_v26 = vpack.c.bf16 %v82_v23, %v82_v23 }
  0x42   :  { %362 = vmatpush3.bf16.msra.mxu0 %v407_v6  ;;  %382 = vmatpush3.bf16.msra.mxu1 %v415_v19 }
  0x43   :  { %363 = vmatprep.subr.bf16.mxu0 %v534_v0  ;;  %383 = vmatprep.subr.bf16.mxu1 %v534_v0 }
  0x46   :  { %364 = vmatpush3.bf16.msra.mxu0 %v408_v11  ;;  %384 = vmatpush3.bf16.msra.mxu1 %v416_v22 }
  0x47   :  { %365 = vmatprep.subr.bf16.mxu0 %v534_v0  ;;  %385 = vmatprep.subr.bf16.mxu1 %v534_v0 }
  0x4a   :  { %366 = vmatpush3.bf16.msra.mxu0 %v409_v18  ;;  %386 = vmatpush3.bf16.msra.mxu1 %v417_v25 }
  0x4b   :  { %367 = vmatprep.subr.bf16.mxu0 %v534_v0  ;;  %387 = vmatprep.subr.bf16.mxu1 %v534_v0 }
  0x4e   :  { %368 = vmatpush3.bf16.msra.mxu0 %v410_v21  ;;  %388 = vmatpush3.bf16.msra.mxu1 %v418_v27 }
  0x4f   :  { %369 = vmatprep.subr.bf16.mxu0 %v534_v0  ;;  %389 = vmatprep.subr.bf16.mxu1 %v534_v0 }
  0x52   :  { %370 = vmatpush3.bf16.msra.mxu0 %v411_v24  ;;  %390 = vmatpush3.bf16.msra.mxu1 %v419_v28 }
  0x55   :  { %372 = vmatmul.mubr.bf16.vlgmr.msra.gmra.mxu0 %v83_v26 }
 0x115   :  { %v186_v31 = vpop.f32.mrf.mxu0 }
 0x116   :  { %v187_v32 = vadd.f32 %v186_v31, %v103_v30 }
 0x117   :  { %v373_v33 = vpop.f32.mrf.mxu0 }
 0x118   :  { %v192_v34 = vmax.f32 %v187_v32, 0.0 }
 0x119   :  { %v189_v35 = vpop.f32.mrf.mxu0 }
 0x11a   :  { %v193_v36 = vpack.c.bf16 %v192_v34, %v192_v34 }
 0x11b   :  { %v374_v37 = vpop.f32.mrf.mxu0 }
 0x11c   :  { %392 = vmatmul.mubr.bf16.vlgmr.msra.gmra.mxu1 %v193_v36 }
 0x1dc   :  { %v296_v40 = vpop.f32.mrf.mxu1 }
 0x1dd   :  { %v297_v41 = vadd.f32 %v296_v40, %v213_v39 }
 0x1de   :  { %v393_v42 = vpop.f32.mrf.mxu1 }
 0x1df   :  { %v302_v43 = vadd.f32 %v297_v41, %v70_v14 }
 0x1e0   :  { %v299_v44 = vpop.f32.mrf.mxu1 }
 0x1e1   :  { %303 = vst [vmem:[#allocation10] sm:$0xff] %v302_v43 }
 0x1e2   :  { %v394_v45 = vpop.f32.mrf.mxu1 }
 0x1e3   :  { %511 = shalt.err (!%p508_p10)
}
 0x1e4   :  { %313 = dma.vmem_to_hbm [thread:$0]  %s311_s3, 128, %s587_s4, [#allocation4]  }
 0x1e5   :  { %526 = dma.done.wait [#allocation4], 128  }
 0x1e6   :  { %527 = vsyncadd [#allocation4], 4294967168 }
 0x1e7   :  { %317 = vsyncpa [#allocation3], 1 }
 0x1e8   :  { %318 = vsyncpa [#allocation6], 1 }
 0x1e9   :  { %319 = vsyncpa [#allocation9], 1 }
 0x1ea   :  { %320 = vsyncpa [#allocation4], 1 }

// kernel: tpu_custom_call.1
= control target key start
LH: loop header
LB: loop body
LE: loop exit
PB: predicated region body
PF: predicated region fallthrough
CT: control target
= control target key end

     0   :  { %9 = vsyncpa [#allocation3], 0  ;;  %s583_s0 = inlined_call_operand.hbm [shape: f32[8,128], index: 0, kind: input, shape index: {}]   ;;  %s584_s1 = inlined_call_operand.hbm [shape: f32[8,128], index: 1, kind: input, shape index: {}]   ;;  %s585_s2 = inlined_call_operand.hbm [shape: bf16[128,128], index: 2, kind: input, shape index: {}]   ;;  %s586_s3 = inlined_call_operand.hbm [shape: bf16[128,128], index: 3, kind: input, shape index: {}]   ;;  %s587_s4 = inlined_call_operand.hbm [shape: f32[8,128], index: 4, kind: output, shape index: {}]  }
   0x1   :  { %10 = vsyncpa [#allocation6], 0 }
   0x2   :  { %11 = vsyncpa [#allocation9], 0 }
   0x3   :  { %12 = vsyncpa [#allocation4], 0  ;;  %s528_s15 = smov [#allocation5]   ;;  %s529_s17 = smov [#allocation2]  }
   0x4   :  { %s29_s16 = sshll.u32 %s528_s15, 4  ;;  %s19_s18 = sshll.u32 %s529_s17, 4  ;;  %s30_s16 = int_to_ptr.vmem [resolvable:$true] %s29_s16  ;;  %s20_s18 = int_to_ptr.vmem [resolvable:$true] %s19_s18 }
   0x5   :  { %s428_s19 = scalar_lea.vmem %s30_s16, 128  ;;  %p433_p1 = scmp.lt.s32.totalorder %s30_s16, %s30_s16 }
   0x6   :  { %p429_p0 = scmp.ne.s32.totalorder %s30_s16, %s428_s19  ;;  %p434_p2 = scmp.lt.s32.totalorder %s428_s19, %s428_s19 }
   0x8   :  { %p435_p3 = por %p434_p2, %p433_p1 }
   0xa   :  { %p436_p4 = pnand %p435_p3, %p429_p0 }
   0xc   :  { %439 = shalt.err (!%p436_p4)
}
   0xd   :  { %32 = dma.hbm_to_vmem [thread:$0]  %s584_s1, 128, %s30_s16, [#allocation6]  }
   0xe   :  { %s448_s22 = scalar_lea.vmem %s20_s18, 128  ;;  %p453_p6 = scmp.lt.s32.totalorder %s20_s18, %s20_s18 }
   0xf   :  { %p449_p5 = scmp.ne.s32.totalorder %s20_s18, %s448_s22  ;;  %p454_p7 = scmp.lt.s32.totalorder %s448_s22, %s448_s22 }
  0x11   :  { %p455_p8 = por %p454_p7, %p453_p6 }
  0x13   :  { %p456_p9 = pnand %p455_p8, %p449_p5 }
  0x15   :  { %459 = shalt.err (!%p456_p9)
}
  0x16   :  { %22 = dma.hbm_to_vmem [thread:$0]  %s583_s0, 128, %s20_s18, [#allocation3]  }
  0x17   :  { %s530_s25 = smov [#allocation7]  }
  0x18   :  { %s38_s26 = sshll.u32 %s530_s25, 4  ;;  %s39_s26 = int_to_ptr.vmem [resolvable:$true] %s38_s26 }
  0x19   :  { %s468_s27 = scalar_lea.vmem %s39_s26, 1024  ;;  %p473_p11 = scmp.lt.s32.totalorder %s39_s26, %s39_s26 }
  0x1a   :  { %p469_p10 = scmp.ne.s32.totalorder %s39_s26, %s468_s27  ;;  %p474_p12 = scmp.lt.s32.totalorder %s468_s27, %s468_s27 }
  0x1c   :  { %p475_p13 = por %p474_p12, %p473_p11 }
  0x1e   :  { %p476_p0 = pnand %p475_p13, %p469_p10 }
  0x20   :  { %479 = shalt.err (!%p476_p0)
}
  0x21   :  { %s531_s1 = smov 64   ;;  %s532_s28 = smov 4  }
  0x22   :  { %44 = dma.hbm_to_vmem [thread:$0]  %s585_s2, 1024, %s39_s26, [#allocation6], %s531_s1, %s531_s1, %s532_s28  }
  0x23   :  { %s533_s5 = smov [#allocation8]  }
  0x24   :  { %s50_s6 = sshll.u32 %s533_s5, 4  ;;  %s51_s6 = int_to_ptr.vmem [resolvable:$true] %s50_s6 }
  0x25   :  { %s488_s0 = scalar_lea.vmem %s51_s6, 1024  ;;  %p493_p2 = scmp.lt.s32.totalorder %s51_s6, %s51_s6 }
  0x26   :  { %p489_p1 = scmp.ne.s32.totalorder %s51_s6, %s488_s0  ;;  %p494_p3 = scmp.lt.s32.totalorder %s488_s0, %s488_s0 }
  0x28   :  { %p495_p4 = por %p494_p3, %p493_p2 }
  0x2a   :  { %p496_p5 = pnand %p495_p4, %p489_p1 }
  0x2c   :  { %499 = shalt.err (!%p496_p5)
}
  0x2d   :  { %56 = dma.hbm_to_vmem [thread:$0]  %s586_s3, 1024, %s51_s6, [#allocation9], %s531_s1, %s531_s1, %s532_s28  }
  0x2e   :  { %520 = dma.done.wait [#allocation3], 128  }
  0x2f   :  { %521 = vsyncadd [#allocation3], 4294967168 }
  0x30   :  { %522 = dma.done.wait [#allocation6], 1152  }
  0x31   :  { %523 = vsyncadd [#allocation6], 4294966144 }
  0x32   :  { %524 = dma.done.wait [#allocation9], 1024  }
  0x33   :  { %525 = vsyncadd [#allocation9], 4294966272  ;;  %v534_v0 = vmov 0.0   ;;  %vm535_vm0 = vmmov 0   ;;  %v404_v1 = vld [vmem:[#allocation7 + $0x38] sm:$0xff]   ;;  %v72_v2 = vlaneseq  ;;  %v405_v3 = vld [vmem:[#allocation7 + $0x30] sm:$0xff]  }
  0x34   :  { %355 = vmatprep.subr.bf16.mxu0 %v534_v0  ;;  %371 = vmatprep.mubr.msk.bf16.mxu0 %vm535_vm0, %v534_v0  ;;  %v406_v5 = vld [vmem:[#allocation7 + $0x28] sm:$0xff]   ;;  %v407_v6 = vld [vmem:[#allocation7 + $0x20] sm:$0xff]   ;;  %v412_v8 = vld [vmem:[#allocation8 + $0x38] sm:$0xff]   ;;  %s536_s2 = smov [#allocation10]  }
  0x35   :  { %375 = vmatprep.subr.bf16.mxu1 %v534_v0  ;;  %391 = vmatprep.mubr.msk.bf16.mxu1 %vm535_vm0, %v534_v0  ;;  %v574_v4 = vshrl.u32 %v72_v2, 7  ;;  %v71_v9 = vld [vmem:[#allocation5] sm:$0xff]  ;;  %v413_v10 = vld [vmem:[#allocation8 + $0x30] sm:$0xff]   ;;  %v414_v15 = vld [vmem:[#allocation8 + $0x28] sm:$0xff]   ;;  %s310_s3 = sshll.u32 %s536_s2, 4  ;;  %s311_s3 = int_to_ptr.vmem [resolvable:$true] %s310_s3 }
  0x36   :  { %356 = vmatpush3.bf16.msra.mxu0 %v404_v1  ;;  %376 = vmatpush3.bf16.msra.mxu1 %v412_v8  ;;  %v408_v11 = vld [vmem:[#allocation7 + $0x18] sm:$0xff]   ;;  %v70_v14 = vld [vmem:[#allocation2] sm:$0xff]  ;;  %v415_v19 = vld [vmem:[#allocation8 + $0x20] sm:$0xff]   ;;  %s500_s9 = scalar_lea.vmem %s311_s3, 128  ;;  %p505_p7 = scmp.lt.s32.totalorder %s311_s3, %s311_s3 }
  0x37   :  { %357 = vmatprep.subr.bf16.mxu0 %v534_v0  ;;  %v74_v7 = vsub.s32 0, %v574_v4  ;;  %377 = vmatprep.subr.bf16.mxu1 %v534_v0  ;;  %v79_v13 = vsub.s32 1, %v574_v4  ;;  %v409_v18 = vld [vmem:[#allocation7 + $0x10] sm:$0xff]   ;;  %v410_v21 = vld [vmem:[#allocation7 + $0x8] sm:$0xff]   ;;  %v416_v22 = vld [vmem:[#allocation8 + $0x18] sm:$0xff]   ;;  %v102_v29 = vsub.s32 2, %v574_v4  ;;  %p501_p6 = scmp.ne.s32.totalorder %s311_s3, %s500_s9  ;;  %p506_p8 = scmp.lt.s32.totalorder %s500_s9, %s500_s9 }
  0x38   :  { %v411_v24 = vld [vmem:[#allocation7] sm:$0xff]   ;;  %v417_v25 = vld [vmem:[#allocation8 + $0x10] sm:$0xff]   ;;  %v418_v27 = vld [vmem:[#allocation8 + $0x8] sm:$0xff]   ;;  %v212_v38 = vsub.s32 3, %v574_v4 }
  0x39   :  { %v75_v12 = vrot.slane %v71_v9, %v74_v7  ;;  %v80_v17 = vrot.slane %v71_v9, %v79_v13  ;;  %v419_v28 = vld [vmem:[#allocation8] sm:$0xff]   ;;  %v103_v30 = vrot.slane %v71_v9, %v102_v29  ;;  %p507_p9 = por %p506_p8, %p505_p7 }
  0x3a   :  { %358 = vmatpush3.bf16.msra.mxu0 %v405_v3  ;;  %378 = vmatpush3.bf16.msra.mxu1 %v413_v10  ;;  %v213_v39 = vrot.slane %v71_v9, %v212_v38 }
  0x3b   :  { %359 = vmatprep.subr.bf16.mxu0 %v534_v0  ;;  %379 = vmatprep.subr.bf16.mxu1 %v534_v0  ;;  %v76_v16 = vmul.f32 %v75_v12, %v70_v14  ;;  %p508_p10 = pnand %p507_p9, %p501_p6 }
  0x3d   :  { %v81_v20 = vadd.f32 %v80_v17, %v76_v16 }
  0x3e   :  { %360 = vmatpush3.bf16.msra.mxu0 %v406_v5  ;;  %380 = vmatpush3.bf16.msra.mxu1 %v414_v15 }
  0x3f   :  { %361 = vmatprep.subr.bf16.mxu0 %v534_v0  ;;  %381 = vmatprep.subr.bf16.mxu1 %v534_v0  ;;  %v82_v23 = vmax.f32 %v81_v20, 0.0 }
  0x41   :  { %v83_v26 = vpack.c.bf16 %v82_v23, %v82_v23 }
  0x42   :  { %362 = vmatpush3.bf16.msra.mxu0 %v407_v6  ;;  %382 = vmatpush3.bf16.msra.mxu1 %v415_v19 }
  0x43   :  { %363 = vmatprep.subr.bf16.mxu0 %v534_v0  ;;  %383 = vmatprep.subr.bf16.mxu1 %v534_v0 }
  0x46   :  { %364 = vmatpush3.bf16.msra.mxu0 %v408_v11  ;;  %384 = vmatpush3.bf16.msra.mxu1 %v416_v22 }
  0x47   :  { %365 = vmatprep.subr.bf16.mxu0 %v534_v0  ;;  %385 = vmatprep.subr.bf16.mxu1 %v534_v0 }
  0x4a   :  { %366 = vmatpush3.bf16.msra.mxu0 %v409_v18  ;;  %386 = vmatpush3.bf16.msra.mxu1 %v417_v25 }
  0x4b   :  { %367 = vmatprep.subr.bf16.mxu0 %v534_v0  ;;  %387 = vmatprep.subr.bf16.mxu1 %v534_v0 }
  0x4e   :  { %368 = vmatpush3.bf16.msra.mxu0 %v410_v21  ;;  %388 = vmatpush3.bf16.msra.mxu1 %v418_v27 }
  0x4f   :  { %369 = vmatprep.subr.bf16.mxu0 %v534_v0  ;;  %389 = vmatprep.subr.bf16.mxu1 %v534_v0 }
  0x52   :  { %370 = vmatpush3.bf16.msra.mxu0 %v411_v24  ;;  %390 = vmatpush3.bf16.msra.mxu1 %v419_v28 }
  0x55   :  { %372 = vmatmul.mubr.bf16.vlgmr.msra.gmra.mxu0 %v83_v26 }
 0x115   :  { %v186_v31 = vpop.f32.mrf.mxu0 }
 0x116   :  { %v187_v32 = vadd.f32 %v186_v31, %v103_v30 }
 0x117   :  { %v373_v33 = vpop.f32.mrf.mxu0 }
 0x118   :  { %v192_v34 = vmax.f32 %v187_v32, 0.0 }
 0x119   :  { %v189_v35 = vpop.f32.mrf.mxu0 }
 0x11a   :  { %v193_v36 = vpack.c.bf16 %v192_v34, %v192_v34 }
 0x11b   :  { %v374_v37 = vpop.f32.mrf.mxu0 }
 0x11c   :  { %392 = vmatmul.mubr.bf16.vlgmr.msra.gmra.mxu1 %v193_v36 }
 0x1dc   :  { %v296_v40 = vpop.f32.mrf.mxu1 }
 0x1dd   :  { %v297_v41 = vadd.f32 %v296_v40, %v213_v39 }
 0x1de   :  { %v393_v42 = vpop.f32.mrf.mxu1 }
 0x1df   :  { %v302_v43 = vadd.f32 %v297_v41, %v70_v14 }
 0x1e0   :  { %v299_v44 = vpop.f32.mrf.mxu1 }
 0x1e1   :  { %303 = vst [vmem:[#allocation10] sm:$0xff] %v302_v43 }
 0x1e2   :  { %v394_v45 = vpop.f32.mrf.mxu1 }
 0x1e3   :  { %511 = shalt.err (!%p508_p10)
}
 0x1e4   :  { %313 = dma.vmem_to_hbm [thread:$0]  %s311_s3, 128, %s587_s4, [#allocation4]  }
 0x1e5   :  { %526 = dma.done.wait [#allocation4], 128  }
 0x1e6   :  { %527 = vsyncadd [#allocation4], 4294967168 }
 0x1e7   :  { %317 = vsyncpa [#allocation3], 1 }
 0x1e8   :  { %318 = vsyncpa [#allocation6], 1 }
 0x1e9   :  { %319 = vsyncpa [#allocation9], 1 }
 0x1ea   :  { %320 = vsyncpa [#allocation4], 1 }

</bundles_post_ra>
